<compile_context>
chip_gen: v6e
topology: v6e:2x2x1
jax: 0.10.0
libtpu: 0.0.40
codegen_flags: <defaults>
</compile_context>

<pallas_src>
import functools

import jax
import jax.numpy as jnp
from jax.experimental import pallas as pl
from jax.experimental.pallas import tpu as pltpu

LN_EPS = 1e-5


def _round_up(a, b):
    return (a + b - 1) // b * b


def _vmem_limit_bytes():
    """Raise scoped VMEM, but never above ~3/4 of physical (v7x has 64 MiB)."""
    cap = 128 * 1024 * 1024
    try:
        cap = int(pltpu.get_tpu_info().vmem_capacity_bytes)
    except Exception:
        pass
    return int(min(96 * 1024 * 1024, (cap * 3) // 4))


def _hier_gating_kernel(
    x_ref, s_ref,
    we0_ref, be0_ref, wg0_ref, bg0_ref, g0_ref, bt0_ref,
    we1_ref, be1_ref, wg1_ref, bg1_ref, g1_ref, bt1_ref,
    *out_refs, inv_d, emit_gates, mxu_dtype,
):
    x = x_ref[...].astype(jnp.float32)

    # Hoist the (1, Dp) parameter rows once; rely on row-broadcast adds.
    be0 = be0_ref[...]
    bg0 = bg0_ref[...]
    g0 = g0_ref[...]
    bt0 = bt0_ref[...]
    be1 = be1_ref[...]
    bg1 = bg1_ref[...]
    g1 = g1_ref[...]
    bt1 = bt1_ref[...]

    def layer_norm(h, gamma, beta):
        # Padded feature columns of h are exactly zero, so summing over the
        # padded lane width and dividing by the *true* feature count gives the
        # exact moments over the real D columns. gamma/beta are zero-padded,
        # so padded output columns stay exactly zero.
        mu = jnp.sum(h, axis=-1, keepdims=True) * inv_d
        ex2 = jnp.sum(h * h, axis=-1, keepdims=True) * inv_d
        var = ex2 - mu * mu
        return (h - mu) * jax.lax.rsqrt(var + LN_EPS) * gamma + beta

    # ---- Level 0: sentiment -> embedding -> gate (bf16 MXU, f32 accumulate) --
    s = s_ref[...].astype(mxu_dtype)
    emb0 = jnp.dot(s, we0_ref[...], preferred_element_type=jnp.float32) + be0
    gw0 = jax.nn.sigmoid(
        jnp.dot(emb0.astype(mxu_dtype), wg0_ref[...],
                preferred_element_type=jnp.float32) + bg0)
    x1 = layer_norm(x * gw0 + x, g0, bt0)

    # ---- Level 1: gate driven by the level-0 output ----
    emb1 = jnp.dot(x1.astype(mxu_dtype), we1_ref[...],
                   preferred_element_type=jnp.float32) + be1
    gw1 = jax.nn.sigmoid(
        jnp.dot(emb1.astype(mxu_dtype), wg1_ref[...],
                preferred_element_type=jnp.float32) + bg1)
    x2 = layer_norm(x1 * gw1 + x1, g1, bt1)

    out_refs[0][...] = x2.astype(out_refs[0].dtype)
    if emit_gates:
        out_refs[1][...] = gw0.astype(out_refs[1].dtype)
        out_refs[2][...] = gw1.astype(out_refs[2].dtype)


def hierarchical_sentiment_gating(
    x, sentiment, params, *,
    tile_m=256,                 # main tuning knob: rows per grid step
    mxu_dtype=jnp.bfloat16,     # MXU operand dtype (f32 elementwise path kept)
    return_gate_weights=True,   # False -> skip 2/3 of HBM writeback
):
    """x: [B, S, D], sentiment: [B, S, Sdim]. Returns (out, [gw0, gw1])."""
    B, S, D = x.shape
    Sdim = sentiment.shape[-1]
    M = B * S

    # Clamp / align the row tile, pad rows + feature lanes.
    tile_m = max(8, min(tile_m, _round_up(M, 8)))
    tile_m = _round_up(tile_m, 8)
    Mp = _round_up(M, tile_m)
    Dp = _round_up(D, 128)   # lane-dense stores

    x2d = jnp.pad(x.reshape(M, D), ((0, Mp - M), (0, Dp - D)))
    s2d = jnp.pad(sentiment.reshape(M, Sdim), ((0, Mp - M), (0, 0)))

    def pad_w(w, rows, cols, dtype):
        return jnp.pad(
            w, ((0, rows - w.shape[0]), (0, cols - w.shape[1]))).astype(dtype)

    f32 = jnp.float32
    weights = (
        # level 0 (sentiment_dim -> d_model)
        pad_w(params["we0"], Sdim, Dp, mxu_dtype),
        pad_w(params["be0"], 1, Dp, f32),
        pad_w(params["wg0"], Dp, Dp, mxu_dtype),
        pad_w(params["bg0"], 1, Dp, f32),
        pad_w(params["g0"], 1, Dp, f32),
        pad_w(params["bt0"], 1, Dp, f32),
        # level 1 (d_model -> d_model)
        pad_w(params["we1"], Dp, Dp, mxu_dtype),
        pad_w(params["be1"], 1, Dp, f32),
        pad_w(params["wg1"], Dp, Dp, mxu_dtype),
        pad_w(params["bg1"], 1, Dp, f32),
        pad_w(params["g1"], 1, Dp, f32),
        pad_w(params["bt1"], 1, Dp, f32),
    )

    x_spec = pl.BlockSpec((tile_m, Dp), lambda i: (i, 0))
    s_spec = pl.BlockSpec((tile_m, Sdim), lambda i: (i, 0))
    w_specs = [pl.BlockSpec(w.shape, lambda i: (0, 0)) for w in weights]

    out_struct = jax.ShapeDtypeStruct((Mp, Dp), x.dtype)
    if return_gate_weights:
        out_shape = (out_struct, out_struct, out_struct)
        out_specs = [x_spec, x_spec, x_spec]
    else:
        out_shape = out_struct
        out_specs = x_spec

    kernel = functools.partial(
        _hier_gating_kernel,
        inv_d=1.0 / D,
        emit_gates=return_gate_weights,
        mxu_dtype=mxu_dtype,
    )

    results = pl.pallas_call(
        kernel,
        out_shape=out_shape,
        grid_spec=pltpu.PrefetchScalarGridSpec(
            num_scalar_prefetch=0,
            grid=(Mp // tile_m,),
            in_specs=[x_spec, s_spec] + w_specs,
            out_specs=out_specs,
        ),
        compiler_params=pltpu.CompilerParams(
            dimension_semantics=("parallel",),
            vmem_limit_bytes=_vmem_limit_bytes(),
        ),
    )(x2d, s2d, *weights)

    def unpad(a):
        return a[:M, :D].reshape(B, S, D)

    if return_gate_weights:
        out, gw0, gw1 = results
        return unpad(out), [unpad(gw0), unpad(gw1)]
    return unpad(results), []


def _reference(x, sentiment, params, *, mxu_dtype=jnp.bfloat16):
    """Pure-JAX reference mirroring the PyTorch forward (precision-matched:
    bf16 matmul operands, f32 accumulation / elementwise, like the kernel)."""
    def level(x_in, sent, we, be, wg, bg, g, bt):
        emb = jnp.dot(sent.astype(mxu_dtype), we.astype(mxu_dtype),
                      preferred_element_type=jnp.float32) + be
        gw = jax.nn.sigmoid(
            jnp.dot(emb.astype(mxu_dtype), wg.astype(mxu_dtype),
                    preferred_element_type=jnp.float32) + bg)
        h = x_in * gw + x_in
        mu = jnp.mean(h, axis=-1, keepdims=True)
        var = jnp.mean((h - mu) ** 2, axis=-1, keepdims=True)
        return (h - mu) * jax.lax.rsqrt(var + LN_EPS) * g + bt, gw

    x1, gw0 = level(x, sentiment, params["we0"], params["be0"], params["wg0"],
                    params["bg0"], params["g0"], params["bt0"])
    x2, gw1 = level(x1, x1, params["we1"], params["be1"], params["wg1"],
                    params["bg1"], params["g1"], params["bt1"])
    return x2, [gw0, gw1]


def init_params(key, d_model, sentiment_dim):
    ks = jax.random.split(key, 8)
    scale0 = 1.0 / jnp.sqrt(sentiment_dim)
    scale1 = 1.0 / jnp.sqrt(d_model)
    # Linear weights stored already transposed to (in, out): y = x @ W + b.
    return {
        # level 0 (sentiment_dim -> d_model)
        "we0": jax.random.uniform(ks[0], (sentiment_dim, d_model), jnp.float32, -scale0, scale0),
        "be0": jax.random.uniform(ks[1], (1, d_model), jnp.float32, -scale0, scale0),
        "wg0": jax.random.uniform(ks[2], (d_model, d_model), jnp.float32, -scale1, scale1),
        "bg0": jax.random.uniform(ks[3], (1, d_model), jnp.float32, -scale1, scale1),
        "g0": jnp.ones((1, d_model), jnp.float32),
        "bt0": jnp.zeros((1, d_model), jnp.float32),
        # level 1 (d_model -> d_model)
        "we1": jax.random.uniform(ks[4], (d_model, d_model), jnp.float32, -scale1, scale1),
        "be1": jax.random.uniform(ks[5], (1, d_model), jnp.float32, -scale1, scale1),
        "wg1": jax.random.uniform(ks[6], (d_model, d_model), jnp.float32, -scale1, scale1),
        "bg1": jax.random.uniform(ks[7], (1, d_model), jnp.float32, -scale1, scale1),
        "g1": jnp.ones((1, d_model), jnp.float32),
        "bt1": jnp.zeros((1, d_model), jnp.float32),
    }


if __name__ == "__main__":
    B, S, D, SDIM = 4, 16, 32, 8
    key = jax.random.PRNGKey(0)
    kx, ks, kp = jax.random.split(key, 3)

    x = jax.random.normal(kx, (B, S, D), jnp.float32)
    sentiment = jax.random.normal(ks, (B, S, SDIM), jnp.float32)
    params = init_params(kp, D, SDIM)

    # Note: nn.Dropout in the PyTorch module is defined but never applied in
    # forward, so it is intentionally omitted.
    # Small tile here so the demo exercises several row-grid steps; production
    # default is tile_m=256 (raise to 512 on v5e/v6e with the raised VMEM cap).
    out, gws = hierarchical_sentiment_gating(x, sentiment, params, tile_m=16)
    out = jax.block_until_ready(out)
    gws = [jax.block_until_ready(g) for g in gws]

    ref_out, ref_gws = _reference(x, sentiment, params)
    assert jnp.allclose(out, ref_out, atol=2e-3, rtol=2e-3)
    assert jnp.allclose(gws[0], ref_gws[0], atol=2e-3, rtol=2e-3)
    assert jnp.allclose(gws[1], ref_gws[1], atol=2e-3, rtol=2e-3)

    # Inference path that drops the two gate-weight writebacks entirely.
    out_only, _ = hierarchical_sentiment_gating(
        x, sentiment, params, tile_m=16, return_gate_weights=False)
    out_only = jax.block_until_ready(out_only)
    assert jnp.allclose(out_only, ref_out, atol=2e-3, rtol=2e-3)

    print("KERNEL_OK")
</pallas_src>

<mosaic_0001>
module attributes {stable_mosaic.version = 11 : i64} {
  func.func @_hier_gating_kernel(%arg0: i32, %arg1: memref<16x128xf32, #tpu.memory_space<vmem>>, %arg2: memref<16x8xf32, #tpu.memory_space<vmem>>, %arg3: memref<8x128xbf16, #tpu.memory_space<vmem>>, %arg4: memref<1x128xf32, #tpu.memory_space<vmem>>, %arg5: memref<128x128xbf16, #tpu.memory_space<vmem>>, %arg6: memref<1x128xf32, #tpu.memory_space<vmem>>, %arg7: memref<1x128xf32, #tpu.memory_space<vmem>>, %arg8: memref<1x128xf32, #tpu.memory_space<vmem>>, %arg9: memref<128x128xbf16, #tpu.memory_space<vmem>>, %arg10: memref<1x128xf32, #tpu.memory_space<vmem>>, %arg11: memref<128x128xbf16, #tpu.memory_space<vmem>>, %arg12: memref<1x128xf32, #tpu.memory_space<vmem>>, %arg13: memref<1x128xf32, #tpu.memory_space<vmem>>, %arg14: memref<1x128xf32, #tpu.memory_space<vmem>>, %arg15: memref<16x128xf32, #tpu.memory_space<vmem>>, %arg16: memref<16x128xf32, #tpu.memory_space<vmem>>, %arg17: memref<16x128xf32, #tpu.memory_space<vmem>>) attributes {dimension_semantics = [#tpu.dimension_semantics<parallel>], iteration_bounds = array<i64: 4>, scalar_prefetch = 0 : i64, scratch_operands = 0 : i64, tpu.core_type = #tpu.core_type<tc>, window_params = [{transform_indices = @transform_0, window_bounds = array<i64: 16, 128>}, {transform_indices = @transform_1, window_bounds = array<i64: 16, 8>}, {pipeline_mode = #tpu.pipeline_mode<synchronous>, transform_indices = @transform_2, window_bounds = array<i64: 8, 128>}, {pipeline_mode = #tpu.pipeline_mode<synchronous>, transform_indices = @transform_3, window_bounds = array<i64: 1, 128>}, {pipeline_mode = #tpu.pipeline_mode<synchronous>, transform_indices = @transform_4, window_bounds = array<i64: 128, 128>}, {pipeline_mode = #tpu.pipeline_mode<synchronous>, transform_indices = @transform_5, window_bounds = array<i64: 1, 128>}, {pipeline_mode = #tpu.pipeline_mode<synchronous>, transform_indices = @transform_6, window_bounds = array<i64: 1, 128>}, {pipeline_mode = #tpu.pipeline_mode<synchronous>, transform_indices = @transform_7, window_bounds = array<i64: 1, 128>}, {pipeline_mode = #tpu.pipeline_mode<synchronous>, transform_indices = @transform_8, window_bounds = array<i64: 128, 128>}, {pipeline_mode = #tpu.pipeline_mode<synchronous>, transform_indices = @transform_9, window_bounds = array<i64: 1, 128>}, {pipeline_mode = #tpu.pipeline_mode<synchronous>, transform_indices = @transform_10, window_bounds = array<i64: 128, 128>}, {pipeline_mode = #tpu.pipeline_mode<synchronous>, transform_indices = @transform_11, window_bounds = array<i64: 1, 128>}, {pipeline_mode = #tpu.pipeline_mode<synchronous>, transform_indices = @transform_12, window_bounds = array<i64: 1, 128>}, {pipeline_mode = #tpu.pipeline_mode<synchronous>, transform_indices = @transform_13, window_bounds = array<i64: 1, 128>}, {transform_indices = @transform_14, window_bounds = array<i64: 16, 128>}, {transform_indices = @transform_15, window_bounds = array<i64: 16, 128>}, {transform_indices = @transform_16, window_bounds = array<i64: 16, 128>}]} {
    %c0 = arith.constant 0 : index
    %c0_0 = arith.constant 0 : index
    %0 = vector.load %arg1[%c0, %c0_0] : memref<16x128xf32, #tpu.memory_space<vmem>>, vector<16x128xf32>
    %c0_1 = arith.constant 0 : index
    %c0_2 = arith.constant 0 : index
    %1 = vector.load %arg4[%c0_1, %c0_2] : memref<1x128xf32, #tpu.memory_space<vmem>>, vector<1x128xf32>
    %c0_3 = arith.constant 0 : index
    %c0_4 = arith.constant 0 : index
    %2 = vector.load %arg6[%c0_3, %c0_4] : memref<1x128xf32, #tpu.memory_space<vmem>>, vector<1x128xf32>
    %c0_5 = arith.constant 0 : index
    %c0_6 = arith.constant 0 : index
    %3 = vector.load %arg7[%c0_5, %c0_6] : memref<1x128xf32, #tpu.memory_space<vmem>>, vector<1x128xf32>
    %c0_7 = arith.constant 0 : index
    %c0_8 = arith.constant 0 : index
    %4 = vector.load %arg8[%c0_7, %c0_8] : memref<1x128xf32, #tpu.memory_space<vmem>>, vector<1x128xf32>
    %c0_9 = arith.constant 0 : index
    %c0_10 = arith.constant 0 : index
    %5 = vector.load %arg10[%c0_9, %c0_10] : memref<1x128xf32, #tpu.memory_space<vmem>>, vector<1x128xf32>
    %c0_11 = arith.constant 0 : index
    %c0_12 = arith.constant 0 : index
    %6 = vector.load %arg12[%c0_11, %c0_12] : memref<1x128xf32, #tpu.memory_space<vmem>>, vector<1x128xf32>
    %c0_13 = arith.constant 0 : index
    %c0_14 = arith.constant 0 : index
    %7 = vector.load %arg13[%c0_13, %c0_14] : memref<1x128xf32, #tpu.memory_space<vmem>>, vector<1x128xf32>
    %c0_15 = arith.constant 0 : index
    %c0_16 = arith.constant 0 : index
    %8 = vector.load %arg14[%c0_15, %c0_16] : memref<1x128xf32, #tpu.memory_space<vmem>>, vector<1x128xf32>
    %c0_17 = arith.constant 0 : index
    %c0_18 = arith.constant 0 : index
    %9 = vector.load %arg2[%c0_17, %c0_18] : memref<16x8xf32, #tpu.memory_space<vmem>>, vector<16x8xf32>
    %10 = arith.truncf %9 : vector<16x8xf32> to vector<16x8xbf16>
    %c0_19 = arith.constant 0 : index
    %c0_20 = arith.constant 0 : index
    %11 = vector.load %arg3[%c0_19, %c0_20] : memref<8x128xbf16, #tpu.memory_space<vmem>>, vector<8x128xbf16>
    %cst = arith.constant dense<0.000000e+00> : vector<16x128xf32>
    %12 = tpu.matmul %10, %11, %cst {dimension_numbers = #tpu.dot_dimension_numbers<[1], [0], [0], [1], [0, 0, 1, 1], [], []>} : vector<16x8xbf16>, vector<8x128xbf16>, vector<16x128xf32> -> vector<16x128xf32>
    %13 = vector.broadcast %1 : vector<1x128xf32> to vector<16x128xf32>
    %14 = arith.addf %12, %13 : vector<16x128xf32>
    %15 = arith.truncf %14 : vector<16x128xf32> to vector<16x128xbf16>
    %c0_21 = arith.constant 0 : index
    %c0_22 = arith.constant 0 : index
    %16 = vector.load %arg5[%c0_21, %c0_22] : memref<128x128xbf16, #tpu.memory_space<vmem>>, vector<128x128xbf16>
    %cst_23 = arith.constant dense<0.000000e+00> : vector<16x128xf32>
    %17 = tpu.matmul %15, %16, %cst_23 {dimension_numbers = #tpu.dot_dimension_numbers<[1], [0], [0], [1], [0, 0, 1, 1], [], []>} : vector<16x128xbf16>, vector<128x128xbf16>, vector<16x128xf32> -> vector<16x128xf32>
    %18 = vector.broadcast %2 : vector<1x128xf32> to vector<16x128xf32>
    %19 = arith.addf %17, %18 : vector<16x128xf32>
    %20 = arith.negf %19 : vector<16x128xf32>
    %21 = math.exp %20 : vector<16x128xf32>
    %cst_24 = arith.constant 1.000000e+00 : f32
    %22 = vector.broadcast %cst_24 : f32 to vector<16x128xf32>
    %23 = arith.addf %22, %21 : vector<16x128xf32>
    %24 = arith.divf %22, %23 : vector<16x128xf32>
    %25 = arith.mulf %0, %24 : vector<16x128xf32>
    %26 = arith.addf %25, %0 : vector<16x128xf32>
    %cst_25 = arith.constant dense<0.000000e+00> : vector<16xf32>
    %27 = vector.multi_reduction <add>, %26, %cst_25 [1] : vector<16x128xf32> to vector<16xf32>
    %28 = vector.shape_cast %27 : vector<16xf32> to vector<16x1xf32>
    %cst_26 = arith.constant 3.125000e-02 : f32
    %29 = vector.broadcast %cst_26 : f32 to vector<16x1xf32>
    %30 = arith.mulf %28, %29 : vector<16x1xf32>
    %31 = arith.mulf %26, %26 : vector<16x128xf32>
    %cst_27 = arith.constant dense<0.000000e+00> : vector<16xf32>
    %32 = vector.multi_reduction <add>, %31, %cst_27 [1] : vector<16x128xf32> to vector<16xf32>
    %33 = vector.shape_cast %32 : vector<16xf32> to vector<16x1xf32>
    %cst_28 = arith.constant 3.125000e-02 : f32
    %34 = vector.broadcast %cst_28 : f32 to vector<16x1xf32>
    %35 = arith.mulf %33, %34 : vector<16x1xf32>
    %36 = arith.mulf %30, %30 : vector<16x1xf32>
    %37 = arith.subf %35, %36 : vector<16x1xf32>
    %38 = vector.broadcast %30 : vector<16x1xf32> to vector<16x128xf32>
    %39 = arith.subf %26, %38 : vector<16x128xf32>
    %cst_29 = arith.constant 9.99999974E-6 : f32
    %40 = vector.broadcast %cst_29 : f32 to vector<16x1xf32>
    %41 = arith.addf %37, %40 : vector<16x1xf32>
    %42 = math.rsqrt %41 : vector<16x1xf32>
    %43 = vector.broadcast %42 : vector<16x1xf32> to vector<16x128xf32>
    %44 = arith.mulf %39, %43 : vector<16x128xf32>
    %45 = vector.broadcast %3 : vector<1x128xf32> to vector<16x128xf32>
    %46 = arith.mulf %44, %45 : vector<16x128xf32>
    %47 = vector.broadcast %4 : vector<1x128xf32> to vector<16x128xf32>
    %48 = arith.addf %46, %47 : vector<16x128xf32>
    %49 = arith.truncf %48 : vector<16x128xf32> to vector<16x128xbf16>
    %c0_30 = arith.constant 0 : index
    %c0_31 = arith.constant 0 : index
    %50 = vector.load %arg9[%c0_30, %c0_31] : memref<128x128xbf16, #tpu.memory_space<vmem>>, vector<128x128xbf16>
    %cst_32 = arith.constant dense<0.000000e+00> : vector<16x128xf32>
    %51 = tpu.matmul %49, %50, %cst_32 {dimension_numbers = #tpu.dot_dimension_numbers<[1], [0], [0], [1], [0, 0, 1, 1], [], []>} : vector<16x128xbf16>, vector<128x128xbf16>, vector<16x128xf32> -> vector<16x128xf32>
    %52 = vector.broadcast %5 : vector<1x128xf32> to vector<16x128xf32>
    %53 = arith.addf %51, %52 : vector<16x128xf32>
    %54 = arith.truncf %53 : vector<16x128xf32> to vector<16x128xbf16>
    %c0_33 = arith.constant 0 : index
    %c0_34 = arith.constant 0 : index
    %55 = vector.load %arg11[%c0_33, %c0_34] : memref<128x128xbf16, #tpu.memory_space<vmem>>, vector<128x128xbf16>
    %cst_35 = arith.constant dense<0.000000e+00> : vector<16x128xf32>
    %56 = tpu.matmul %54, %55, %cst_35 {dimension_numbers = #tpu.dot_dimension_numbers<[1], [0], [0], [1], [0, 0, 1, 1], [], []>} : vector<16x128xbf16>, vector<128x128xbf16>, vector<16x128xf32> -> vector<16x128xf32>
    %57 = vector.broadcast %6 : vector<1x128xf32> to vector<16x128xf32>
    %58 = arith.addf %56, %57 : vector<16x128xf32>
    %59 = arith.negf %58 : vector<16x128xf32>
    %60 = math.exp %59 : vector<16x128xf32>
    %cst_36 = arith.constant 1.000000e+00 : f32
    %61 = vector.broadcast %cst_36 : f32 to vector<16x128xf32>
    %62 = arith.addf %61, %60 : vector<16x128xf32>
    %63 = arith.divf %61, %62 : vector<16x128xf32>
    %64 = arith.mulf %48, %63 : vector<16x128xf32>
    %65 = arith.addf %64, %48 : vector<16x128xf32>
    %cst_37 = arith.constant dense<0.000000e+00> : vector<16xf32>
    %66 = vector.multi_reduction <add>, %65, %cst_37 [1] : vector<16x128xf32> to vector<16xf32>
    %67 = vector.shape_cast %66 : vector<16xf32> to vector<16x1xf32>
    %cst_38 = arith.constant 3.125000e-02 : f32
    %68 = vector.broadcast %cst_38 : f32 to vector<16x1xf32>
    %69 = arith.mulf %67, %68 : vector<16x1xf32>
    %70 = arith.mulf %65, %65 : vector<16x128xf32>
    %cst_39 = arith.constant dense<0.000000e+00> : vector<16xf32>
    %71 = vector.multi_reduction <add>, %70, %cst_39 [1] : vector<16x128xf32> to vector<16xf32>
    %72 = vector.shape_cast %71 : vector<16xf32> to vector<16x1xf32>
    %cst_40 = arith.constant 3.125000e-02 : f32
    %73 = vector.broadcast %cst_40 : f32 to vector<16x1xf32>
    %74 = arith.mulf %72, %73 : vector<16x1xf32>
    %75 = arith.mulf %69, %69 : vector<16x1xf32>
    %76 = arith.subf %74, %75 : vector<16x1xf32>
    %77 = vector.broadcast %69 : vector<16x1xf32> to vector<16x128xf32>
    %78 = arith.subf %65, %77 : vector<16x128xf32>
    %cst_41 = arith.constant 9.99999974E-6 : f32
    %79 = vector.broadcast %cst_41 : f32 to vector<16x1xf32>
    %80 = arith.addf %76, %79 : vector<16x1xf32>
    %81 = math.rsqrt %80 : vector<16x1xf32>
    %82 = vector.broadcast %81 : vector<16x1xf32> to vector<16x128xf32>
    %83 = arith.mulf %78, %82 : vector<16x128xf32>
    %84 = vector.broadcast %7 : vector<1x128xf32> to vector<16x128xf32>
    %85 = arith.mulf %83, %84 : vector<16x128xf32>
    %86 = vector.broadcast %8 : vector<1x128xf32> to vector<16x128xf32>
    %87 = arith.addf %85, %86 : vector<16x128xf32>
    %c0_42 = arith.constant 0 : index
    %c0_43 = arith.constant 0 : index
    %88 = vector.load %arg15[%c0_42, %c0_43] : memref<16x128xf32, #tpu.memory_space<vmem>>, vector<16x128xf32>
    tpu.vector_store %arg15[%c0_42, %c0_43], %87 {strides = array<i32>} : memref<16x128xf32, #tpu.memory_space<vmem>>, vector<16x128xf32>,
    %c0_44 = arith.constant 0 : index
    %c0_45 = arith.constant 0 : index
    %89 = vector.load %arg16[%c0_44, %c0_45] : memref<16x128xf32, #tpu.memory_space<vmem>>, vector<16x128xf32>
    tpu.vector_store %arg16[%c0_44, %c0_45], %24 {strides = array<i32>} : memref<16x128xf32, #tpu.memory_space<vmem>>, vector<16x128xf32>,
    %c0_46 = arith.constant 0 : index
    %c0_47 = arith.constant 0 : index
    %90 = vector.load %arg17[%c0_46, %c0_47] : memref<16x128xf32, #tpu.memory_space<vmem>>, vector<16x128xf32>
    tpu.vector_store %arg17[%c0_46, %c0_47], %63 {strides = array<i32>} : memref<16x128xf32, #tpu.memory_space<vmem>>, vector<16x128xf32>,
    return
  }
  func.func @transform_0(%arg0: i32) -> (i32, i32) {
    %c0_i32 = arith.constant 0 : i32
    %c0_i32_0 = arith.constant 0 : i32
    return %arg0, %c0_i32 : i32, i32
  }
  func.func @transform_1(%arg0: i32) -> (i32, i32) {
    %c0_i32 = arith.constant 0 : i32
    %c0_i32_0 = arith.constant 0 : i32
    return %arg0, %c0_i32 : i32, i32
  }
  func.func @transform_2(%arg0: i32) -> (i32, i32) {
    %c0_i32 = arith.constant 0 : i32
    %c0_i32_0 = arith.constant 0 : i32
    %c0_i32_1 = arith.constant 0 : i32
    return %c0_i32, %c0_i32_0 : i32, i32
  }
  func.func @transform_3(%arg0: i32) -> (i32, i32) {
    %c0_i32 = arith.constant 0 : i32
    %c0_i32_0 = arith.constant 0 : i32
    %c0_i32_1 = arith.constant 0 : i32
    return %c0_i32, %c0_i32_0 : i32, i32
  }
  func.func @transform_4(%arg0: i32) -> (i32, i32) {
    %c0_i32 = arith.constant 0 : i32
    %c0_i32_0 = arith.constant 0 : i32
    %c0_i32_1 = arith.constant 0 : i32
    return %c0_i32, %c0_i32_0 : i32, i32
  }
  func.func @transform_5(%arg0: i32) -> (i32, i32) {
    %c0_i32 = arith.constant 0 : i32
    %c0_i32_0 = arith.constant 0 : i32
    %c0_i32_1 = arith.constant 0 : i32
    return %c0_i32, %c0_i32_0 : i32, i32
  }
  func.func @transform_6(%arg0: i32) -> (i32, i32) {
    %c0_i32 = arith.constant 0 : i32
    %c0_i32_0 = arith.constant 0 : i32
    %c0_i32_1 = arith.constant 0 : i32
    return %c0_i32, %c0_i32_0 : i32, i32
  }
  func.func @transform_7(%arg0: i32) -> (i32, i32) {
    %c0_i32 = arith.constant 0 : i32
    %c0_i32_0 = arith.constant 0 : i32
    %c0_i32_1 = arith.constant 0 : i32
    return %c0_i32, %c0_i32_0 : i32, i32
  }
  func.func @transform_8(%arg0: i32) -> (i32, i32) {
    %c0_i32 = arith.constant 0 : i32
    %c0_i32_0 = arith.constant 0 : i32
    %c0_i32_1 = arith.constant 0 : i32
    return %c0_i32, %c0_i32_0 : i32, i32
  }
  func.func @transform_9(%arg0: i32) -> (i32, i32) {
    %c0_i32 = arith.constant 0 : i32
    %c0_i32_0 = arith.constant 0 : i32
    %c0_i32_1 = arith.constant 0 : i32
    return %c0_i32, %c0_i32_0 : i32, i32
  }
  func.func @transform_10(%arg0: i32) -> (i32, i32) {
    %c0_i32 = arith.constant 0 : i32
    %c0_i32_0 = arith.constant 0 : i32
    %c0_i32_1 = arith.constant 0 : i32
    return %c0_i32, %c0_i32_0 : i32, i32
  }
  func.func @transform_11(%arg0: i32) -> (i32, i32) {
    %c0_i32 = arith.constant 0 : i32
    %c0_i32_0 = arith.constant 0 : i32
    %c0_i32_1 = arith.constant 0 : i32
    return %c0_i32, %c0_i32_0 : i32, i32
  }
  func.func @transform_12(%arg0: i32) -> (i32, i32) {
    %c0_i32 = arith.constant 0 : i32
    %c0_i32_0 = arith.constant 0 : i32
    %c0_i32_1 = arith.constant 0 : i32
    return %c0_i32, %c0_i32_0 : i32, i32
  }
  func.func @transform_13(%arg0: i32) -> (i32, i32) {
    %c0_i32 = arith.constant 0 : i32
    %c0_i32_0 = arith.constant 0 : i32
    %c0_i32_1 = arith.constant 0 : i32
    return %c0_i32, %c0_i32_0 : i32, i32
  }
  func.func @transform_14(%arg0: i32) -> (i32, i32) {
    %c0_i32 = arith.constant 0 : i32
    %c0_i32_0 = arith.constant 0 : i32
    return %arg0, %c0_i32 : i32, i32
  }
  func.func @transform_15(%arg0: i32) -> (i32, i32) {
    %c0_i32 = arith.constant 0 : i32
    %c0_i32_0 = arith.constant 0 : i32
    return %arg0, %c0_i32 : i32, i32
  }
  func.func @transform_16(%arg0: i32) -> (i32, i32) {
    %c0_i32 = arith.constant 0 : i32
    %c0_i32_0 = arith.constant 0 : i32
    return %arg0, %c0_i32 : i32, i32
  }
}

</mosaic_0001>

<bundles_post_ra>
// kernel: tpu_custom_call.1
= control target key start
LH: loop header
LB: loop body
LE: loop exit
PB: predicated region body
PF: predicated region fallthrough
CT: control target
= control target key end

     0   :  { %s2288_s0 = inlined_call_operand.vmem [shape: f32[64,128], index: 0, kind: input, shape index: {}]   ;;  %s2289_s1 = inlined_call_operand.vmem [shape: f32[64,8], index: 1, kind: input, shape index: {}]   ;;  %s2290_s2 = inlined_call_operand.vmem [shape: bf16[8,128], index: 2, kind: input, shape index: {}]   ;;  %s2291_s3 = inlined_call_operand.vmem [shape: f32[1,128], index: 3, kind: input, shape index: {}]   ;;  %s2292_s4 = inlined_call_operand.hbm [shape: bf16[128,128], index: 4, kind: input, shape index: {}]   ;;  %s2293_s5 = inlined_call_operand.vmem [shape: f32[1,128], index: 5, kind: input, shape index: {}]   ;;  %s2294_s6 = inlined_call_operand.vmem [shape: f32[1,128], index: 6, kind: input, shape index: {}]   ;;  %s2295_s7 = inlined_call_operand.vmem [shape: f32[1,128], index: 7, kind: input, shape index: {}]   ;;  %s2296_s8 = inlined_call_operand.hbm [shape: bf16[128,128], index: 8, kind: input, shape index: {}]   ;;  %s2297_s9 = inlined_call_operand.vmem [shape: f32[1,128], index: 9, kind: input, shape index: {}]   ;;  %s2298_s10 = inlined_call_operand.hbm [shape: bf16[128,128], index: 10, kind: input, shape index: {}]   ;;  %s2299_s11 = inlined_call_operand.vmem [shape: f32[1,128], index: 11, kind: input, shape index: {}]   ;;  %s2300_s12 = inlined_call_operand.vmem [shape: f32[1,128], index: 12, kind: input, shape index: {}]   ;;  %s2301_s13 = inlined_call_operand.vmem [shape: f32[1,128], index: 13, kind: input, shape index: {}]   ;;  %s2302_s14 = inlined_call_operand.hbm [shape: f32[64,128], index: 14, kind: output, shape index: {0}]   ;;  %s2303_s15 = inlined_call_operand.hbm [shape: f32[64,128], index: 15, kind: output, shape index: {1}]   ;;  %s2304_s16 = inlined_call_operand.hbm [shape: f32[64,128], index: 16, kind: output, shape index: {2}]  }
   0x1   :  { %2316 = sst [smem:[#allocation22_spill]] %s2288_s0 }
   0x2   :  { %2317 = sst [smem:[#allocation23_spill]] %s2289_s1 }
   0x3   :  { %2318 = sst [smem:[#allocation24_spill]] %s2290_s2 }
   0x4   :  { %2319 = sst [smem:[#allocation25_spill]] %s2291_s3 }
   0x5   :  { %22 = vsyncpa [#allocation3], 0 }
   0x6   :  { %23 = vsyncpa [#allocation6], 0 }
   0x7   :  { %24 = vsyncpa [#allocation4], 0 }
   0x8   :  { %26 = vsyncpa [#allocation4 + $0x1], 0 }
   0x9   :  { %27 = vsyncpa [#allocation10], 0 }
   0xa   :  { %29 = vsyncpa [#allocation10 + $0x1], 0  ;;  %s1957_s21 = smov 0   ;;  %s1959_s22 = smov 0  }
   0xb   :  { %s1961_s23 = smov 0   ;;  %s1963_s24 = smov 0  }
   0xc LB: > { %2320 = sst [smem:[#allocation16_spill]] %s1846_s21  ;;  %s1978_s25 = sadd.s32 4294967295, %s1858_s24   ;;  %s1858_s24 = sphi %s1963_s24, %s2345_s24   ;;  %s1854_s23 = sphi %s1961_s23, %s2347_s23   ;;  %s1850_s22 = sphi %s1959_s22, %s2349_s22   ;;  %s1846_s21 = sphi %s1957_s21, %s2348_s21  }
   0xd   : > { %2321 = sst [smem:[#allocation17_spill]] %s1854_s23  ;;  %s2305_s26 = sadd.s32 4294967294, %s1858_s24  }
   0xe   : > { %2322 = sst [smem:[#allocation18_spill]] %s1858_s24  ;;  %s1982_s27 = sadd.s32 1, %s1858_s24  }
   0xf   : > { %2323 = sst [smem:[#allocation19_spill]] %s1982_s27  ;;  %s346_s28 = sadd.s32 1, %s1854_s23 }
  0x10   : > { %s343_s29 = ssub.s32 %s1858_s24, %s1982_s27  ;;  %p356_p0 = scmp.ne.s32.totalorder %s1854_s23, %s1850_s22 }
  0x11   : > { %p344_p1 = scmp.eq.s32.totalorder %s343_s29, 0  ;;  %p357_p2 = scmp.eq.s32.totalorder %s1978_s25, 3 }
  0x12   : > { %p362_p3 = scmp.ne.s32.totalorder %s1850_s22, %s1846_s21  ;;  %p363_p4 = scmp.eq.s32.totalorder %s2305_s26, 3 }
  0x13   : > { %s1995_s30 = scalar_select %p344_p1, %s1854_s23, %s346_s28  }
  0x14   : > { %p1997_p5 = por %p357_p2, %p356_p0  ;;  %p2001_p6 = por %p363_p4, %p362_p3 }
  0x15   : > { %2324 = sst [smem:[#allocation20_spill]] %s1995_s30  ;;  %p1360_p7 = scmp.ge.s32.totalorder %s1858_s24, 1 }
  0x16   : > { %s2325_s0 = scalar_select %p1997_p5, 1, 0 }
  0x17   : > { %s2326_s17 = scalar_select %p2001_p6, 1, 0 }
  0x18   : > { %p422_p8 = scmp.lt.s32.totalorder %s1858_s24, 5  ;;  %p2311_p9 = scmp.eq.s32.totalorder %s1978_s25, 0 }
  0x19   : > { %2327 = sst [smem:[#allocation21_spill]] %s2326_s17  ;;  %s1860_s19 = smov [#allocation5]  }
  0x1a   : > { %p2008_p10 = pnand %p1360_p7, %p422_p8  ;;  %s462_s20 = sshll.u32 %s1860_s19, 4  ;;  %s463_s20 = int_to_ptr.vmem [resolvable:$true] %s462_s20 }
  0x1b   : > { %s1861_s29 = smov [#allocation2]   ;;  %s1862_s30 = smov [#allocation7]  }
  0x1c   : > { %p1540_p11 = pneg %p2008_p10  ;;  %s440_s26 = sshll.u32 %s1861_s29, 4  ;;  %s441_s26 = int_to_ptr.vmem [resolvable:$true] %s440_s26 }
  0x1d   : > { %s478_s23 = sshll.u32 %s1862_s30, 4  ;;  %s1667_s27 = scalar_lea.vmem %s463_s20, 1024  ;;  %s479_s23 = int_to_ptr.vmem [resolvable:$true] %s478_s23 }
  0x1e   : > { %p2016_p12 = pnand %p2311_p9, %p1540_p11  ;;  %p1668_p0 = scmp.ne.s32.totalorder %s463_s20, %s1667_s27 }
  0x1f   : > { %p1675_p3 = scmp.lt.s32.totalorder %s463_s20, %s463_s20  ;;  %p1676_p4 = scmp.lt.s32.totalorder %s1667_s27, %s1667_s27 }
  0x20   : > { %p1658_p13 = pneg %p2016_p12 }
  0x21   : > { %p1677_p7 = por %p1676_p4, %p1675_p3 }
  0x22   : > { %p1670_p1 = pnand %p1668_p0, %p1658_p13 }
  0x24   : > { %p1671_p2 = pneg %p1670_p1 }
  0x26   : > { %p1678_p8 = pnand %p1677_p7, %p1671_p2 }
  0x28   : > { %1681 = shalt.err (!%p1678_p8)
}
  0x29   : > { %s1863_s19 = smov 64   ;;  %s1864_s29 = smov 4  }
  0x2a   : > { %1546 = dma.hbm_to_vmem [thread:$0]  (!%p2016_p12), %s2296_s8, 1024, %s463_s20, [#allocation6], %s1863_s19, %s1863_s19, %s1864_s29  }
  0x2b   : > { %s1693_s21 = scalar_lea.vmem %s441_s26, 1024  ;;  %p1701_p9 = scmp.lt.s32.totalorder %s441_s26, %s441_s26 }
  0x2c   : > { %p1694_p11 = scmp.ne.s32.totalorder %s441_s26, %s1693_s21  ;;  %p1702_p6 = scmp.lt.s32.totalorder %s1693_s21, %s1693_s21 }
  0x2e   : > { %p1696_p0 = pnand %p1694_p11, %p1658_p13  ;;  %p1703_p3 = por %p1702_p6, %p1701_p9 }
  0x30   : > { %p1697_p1 = pneg %p1696_p0 }
  0x32   : > { %p1704_p2 = pnand %p1703_p3, %p1697_p1 }
  0x34   : > { %1707 = shalt.err (!%p1704_p2)
}
  0x35   : > { %1543 = dma.hbm_to_vmem [thread:$0]  (!%p2016_p12), %s2292_s4, 1024, %s441_s26, [#allocation3], %s1863_s19, %s1863_s19, %s1864_s29  }
  0x36   : > { %s1719_s17 = scalar_lea.vmem %s479_s23, 1024  ;;  %p1727_p11 = scmp.lt.s32.totalorder %s479_s23, %s479_s23 }
  0x37   : > { %p1720_p4 = scmp.ne.s32.totalorder %s479_s23, %s1719_s17  ;;  %p1728_p0 = scmp.lt.s32.totalorder %s1719_s17, %s1719_s17 }
  0x39   : > { %p1722_p7 = pnand %p1720_p4, %p1658_p13  ;;  %p1729_p5 = por %p1728_p0, %p1727_p11 }
  0x3b   : > { %p1723_p8 = pneg %p1722_p7 }
  0x3d   : > { %p1730_p6 = pnand %p1729_p5, %p1723_p8 }
  0x3f   : > { %1733 = shalt.err (!%p1730_p6)
}
  0x40   : > { %1549 = dma.hbm_to_vmem [thread:$0]  (!%p2016_p12), %s2298_s10, 1024, %s479_s23, [#allocation6], %s1863_s19, %s1863_s19, %s1864_s29  }
  0x41   : > { %521 = sbr.rel (%p2008_p10) target bundleno = 1307 (0x51b), region = 76  ;;  %p2330_p9 = scmp.eq.s32.totalorder (!%p2008_p10), %s1978_s25, 0 }
  0x46   : > { %1829 = dma.done.wait (%p2330_p9), [#allocation3], 1024   ;;  %p2331_p13 = pmov %p2330_p9 }
  0x47   : > { %p2332_p1 = pmov %p2330_p9 }
  0x48   : > { %1831 = vsyncadd (%p2331_p13), [#allocation3], 4294966272 }
  0x49   : > { %1833 = dma.done.wait (%p2332_p1), [#allocation6], 2048   ;;  %p2333_p5 = pmov %p2332_p1 }
  0x4a   : > { %s1372_s24 = sshll.u32 %s1978_s25, 1  ;;  %v1865_v0 = vmov 0.0   ;;  %vm1866_vm0 = vmmov 0   ;;  %vm634_vm1 = vcmask 1043456   ;;  %s2334_s1 = sld [smem:[#allocation23_spill]]  ;;  %v1608_v6 = vld [vmem:[#allocation2 + $0x38] sm:$0xff]  }
  0x4b   : > { %1835 = vsyncadd (%p2333_p5), [#allocation6], 4294965248  ;;  %1456 = vmatprep.subr.bf16.mxu0 %v1865_v0  ;;  %1458 = vmatprep.mubr.msk.bf16.mxu0 %vm1866_vm0, %v1865_v0  ;;  %p595_p10 = scmp.lt.s32.totalorder %s1372_s24, 7  ;;  %s2335_s2 = sld [smem:[#allocation24_spill]]  ;;  %vm630_vm2 = vcmask 64512   ;;  %v1609_v7 = vld [vmem:[#allocation2 + $0x30] sm:$0xff]  }
  0x4c   : > { %1462 = vmatprep.subr.bf16.mxu1 %v1865_v0  ;;  %1478 = vmatprep.mubr.msk.bf16.mxu1 %vm1866_vm0, %v1865_v0  ;;  %v1610_v8 = vld [vmem:[#allocation2 + $0x28] sm:$0xff]   ;;  %v1611_v9 = vld [vmem:[#allocation2 + $0x20] sm:$0xff]   ;;  %v1612_v10 = vld [vmem:[#allocation2 + $0x18] sm:$0xff]   ;;  %s2336_s3 = sld [smem:[#allocation25_spill]]  ;;  %s2315_s20 = sand.u32 1, %s1850_s22  }
  0x4d   : > { %s2351_s24 = smov (!%p595_p10, %s1372_s24), 7  ;;  %1463 = vmatpush3.bf16.msra.mxu1 %v1608_v6  ;;  %v1613_v11 = vld [vmem:[#allocation2 + $0x10] sm:$0xff]   ;;  %v1614_v12 = vld [vmem:[#allocation2 + $0x8] sm:$0xff]   ;;  %v1615_v13 = vld [vmem:[#allocation2] sm:$0xff]   ;;  %s2101_s29 = sshll.u32 %s2315_s20, 4 }
  0x4e   : > { %s1373_s23 = sshll.u32 %s2351_s24, 3  ;;  %1464 = vmatprep.subr.bf16.mxu1 %v1865_v0  ;;  %v1378_v22 = vld [vmem:[%s2293_s5] ss:$0 sm:$0xff]  ;;  %s2104_s30 = scalar_lea.vmem [#allocation9], %s2101_s29  ;;  %v1616_v45 = vld [vmem:[#allocation5 + $0x38] sm:$0xff]   ;;  %v1617_v46 = vld [vmem:[#allocation5 + $0x30] sm:$0xff]  }
  0x4f   : > { %v1618_v47 = vld [vmem:[#allocation5 + $0x28] sm:$0xff]   ;;  %v1619_v48 = vld [vmem:[#allocation5 + $0x20] sm:$0xff]   ;;  %v1620_v49 = vld [vmem:[#allocation5 + $0x18] sm:$0xff]   ;;  %s1142_s24 = sand.u32 1, %s1978_s25   ;;  %s1177_s26 = sshll.u32 %s2104_s30, 4  ;;  %s2172_s26 = int_to_ptr.vmem [resolvable:$true] %s1177_s26 }
  0x50   : > { %s604_s28 = scalar_lea.vmem %s2334_s1, %s1373_s23  ;;  %v1621_v50 = vld [vmem:[#allocation5 + $0x10] sm:$0xff]   ;;  %v1622_v51 = vld [vmem:[#allocation5 + $0x8] sm:$0xff]   ;;  %v1623_v52 = vld [vmem:[#allocation5] sm:$0xff]   ;;  %s2174_s18 = scalar_lea.sflag [#allocation10], %s1142_s24 }
  0x51   : > { %v623_v1 = vld [vmem:[%s2335_s2] sm:$0xf]  ;;  %v621_v3 = vld [vmem:[%s604_s28 + $0x8] sm:$0xff]  ;;  %1465 = vmatpush3.bf16.msra.mxu1 %v1609_v7  ;;  %v1624_v53 = vld [vmem:[#allocation7 + $0x38] sm:$0xff]   ;;  %p2338_p3 = scmp.ne.s32.totalorder %s2325_s0, 0 }
  0x52   : > { %v620_v2 = vld [vmem:[%s604_s28] sm:$0xff]  ;;  %v636_v4 = vsel %vm634_vm1, %v623_v1, 0  ;;  %1466 = vmatprep.subr.bf16.mxu1 %v1865_v0  ;;  %s2337_s28 = sld [smem:[#allocation22_spill]]  ;;  %v1625_v54 = vld [vmem:[#allocation7 + $0x30] sm:$0xff]   ;;  %v1626_v55 = vld [vmem:[#allocation7 + $0x28] sm:$0xff]  }
  0x53   : > { %v622_v5 = vpack.c.bf16 %v621_v3, %v620_v2  ;;  %1457 = vmatpush3.bf16.msra.mxu0 %v636_v4  ;;  %v1376_v15 = vld [vmem:[%s2336_s3] ss:$0 sm:$0xff]  ;;  %v1628_v57 = vld [vmem:[#allocation7 + $0x18] sm:$0xff]   ;;  %v1629_v58 = vld [vmem:[#allocation7 + $0x10] sm:$0xff]  }
  0x54   : > { %1482 = vmatprep.subr.bf16.mxu0 %v1865_v0  ;;  %v1627_v56 = vld [vmem:[#allocation7 + $0x20] sm:$0xff]  }
  0x55   : > { %1467 = vmatpush3.bf16.msra.mxu1 %v1610_v8 }
  0x56   : > { %1459 = vmatmul.mubr.msk.bf16.vlgmr.msra.gmra.mxu0 %vm630_vm2, %v622_v5  ;;  %1468 = vmatprep.subr.bf16.mxu1 %v1865_v0 }
  0x57   : > { %1498 = vmatprep.mubr.msk.bf16.mxu0 %vm1866_vm0, %v1865_v0  ;;  %1483 = vmatpush3.bf16.msra.mxu0 %v1616_v45 }
  0x58   : > { %s598_s19 = scalar_lea.vmem %s2337_s28, %s1373_s23  ;;  %1484 = vmatprep.subr.bf16.mxu0 %v1865_v0  ;;  %s2163_s23 = sshll.u32 %s1978_s25, 8 }
  0x59   : > { %1469 = vmatpush3.bf16.msra.mxu1 %v1611_v9  ;;  %v610_v35 = vld [vmem:[%s598_s19] sm:$0xff]  ;;  %v611_v38 = vld [vmem:[%s598_s19 + $0x8] sm:$0xff]  ;;  %s2147_s19 = scalar_lea.vmem [#allocation11], %s2101_s29  ;;  %s2169_s21 = scalar_lea.hbm %s2303_s15, %s2163_s23 }
  0x5a   : > { %1470 = vmatprep.subr.bf16.mxu1 %v1865_v0  ;;  %s1734_s28 = scalar_lea.vmem %s2172_s26, 256  ;;  %s1867_s25 = smov [#allocation9]  }
  0x5b   : > { %1485 = vmatpush3.bf16.msra.mxu0 %v1617_v46  ;;  %p1735_p12 = scmp.ne.s32.totalorder %s2172_s26, %s1734_s28  ;;  %s1738_s20 = sshll.u32 %s1867_s25, 4  ;;  %s1739_s20 = int_to_ptr.vmem [resolvable:$false] %s1738_s20 }
  0x5c   : > { %1486 = vmatprep.subr.bf16.mxu0 %v1865_v0  ;;  %s1740_s1 = scalar_lea.vmem %s1739_s20, 512  ;;  %p1741_p7 = scmp.lt.s32.totalorder %s2172_s26, %s1739_s20 }
  0x5d   : > { %1471 = vmatpush3.bf16.msra.mxu1 %v1612_v10  ;;  %p1736_p2 = pnand %p1735_p12, %p2338_p3  ;;  %p1742_p8 = scmp.lt.s32.totalorder %s1740_s1, %s1734_s28 }
  0x5e   : > { %1472 = vmatprep.subr.bf16.mxu1 %v1865_v0 }
  0x5f   : > { %1487 = vmatpush3.bf16.msra.mxu0 %v1618_v47  ;;  %p1737_p4 = pneg %p1736_p2  ;;  %p1743_p11 = por %p1742_p8, %p1741_p7 }
  0x60   : > { %1488 = vmatprep.subr.bf16.mxu0 %v1865_v0 }
  0x61   : > { %1473 = vmatpush3.bf16.msra.mxu1 %v1613_v11  ;;  %p1744_p0 = pnand %p1743_p11, %p1737_p4 }
  0x62   : > { %1474 = vmatprep.subr.bf16.mxu1 %v1865_v0 }
  0x63   : > { %1489 = vmatpush3.bf16.msra.mxu0 %v1619_v48 }
  0x64   : > { %1490 = vmatprep.subr.bf16.mxu0 %v1865_v0 }
  0x65   : > { %1475 = vmatpush3.bf16.msra.mxu1 %v1614_v12 }
  0x66   : > { %1476 = vmatprep.subr.bf16.mxu1 %v1865_v0 }
  0x67   : > { %1491 = vmatpush3.bf16.msra.mxu0 %v1620_v49 }
  0x68   : > { %1492 = vmatprep.subr.bf16.mxu0 %v1865_v0 }
  0x69   : > { %1477 = vmatpush3.bf16.msra.mxu1 %v1615_v13  ;;  %v1389_v13 = vld [vmem:[%s2294_s6] ss:$0 sm:$0xff] }
  0x6a   : > { %1502 = vmatprep.subr.bf16.mxu1 %v1865_v0 }
  0x6b   : > { %1493 = vmatpush3.bf16.msra.mxu0 %v1621_v50 }
  0x6c   : > { %1494 = vmatprep.subr.bf16.mxu0 %v1865_v0 }
  0x6f   : > { %1495 = vmatpush3.bf16.msra.mxu0 %v1622_v51 }
  0x70   : > { %1496 = vmatprep.subr.bf16.mxu0 %v1865_v0 }
  0x73   : > { %1497 = vmatpush3.bf16.msra.mxu0 %v1623_v52 }
 0x116   : > { %v672_v14 = vpop.f32.mrf.mxu0 }
 0x117   : > { %v673_v18 = vadd.f32 %v1376_v15, %v672_v14 }
 0x118   : > { %v1460_v16 = vpop.f32.mrf.mxu0 }
 0x11a   : > { %v675_v17 = vpop.f32.mrf.mxu0 }
 0x11b   : > { %v676_v19 = vadd.f32 %v1376_v15, %v675_v17 }
 0x11c   : > { %v1461_v20 = vpop.f32.mrf.mxu0 }
 0x11d   : > { %v679_v21 = vpack.c.bf16 %v676_v19, %v673_v18  ;;  %v1390_v18 = vld [vmem:[%s2295_s7] ss:$0 sm:$0xff] }
 0x11f   : > { %1479 = vmatmul.mubr.bf16.vlgmr.msra.gmra.mxu1 %v679_v21 }
 0x120   : > { %1518 = vmatprep.mubr.msk.bf16.mxu1 %vm1866_vm0, %v1865_v0  ;;  %1503 = vmatpush3.bf16.msra.mxu1 %v1624_v53 }
 0x121   : > { %1504 = vmatprep.subr.bf16.mxu1 %v1865_v0 }
 0x124   : > { %1505 = vmatpush3.bf16.msra.mxu1 %v1625_v54 }
 0x125   : > { %1506 = vmatprep.subr.bf16.mxu1 %v1865_v0 }
 0x128   : > { %1507 = vmatpush3.bf16.msra.mxu1 %v1626_v55 }
 0x129   : > { %1508 = vmatprep.subr.bf16.mxu1 %v1865_v0 }
 0x12c   : > { %1509 = vmatpush3.bf16.msra.mxu1 %v1627_v56 }
 0x12d   : > { %1510 = vmatprep.subr.bf16.mxu1 %v1865_v0 }
 0x130   : > { %1511 = vmatpush3.bf16.msra.mxu1 %v1628_v57 }
 0x131   : > { %1512 = vmatprep.subr.bf16.mxu1 %v1865_v0 }
 0x134   : > { %1513 = vmatpush3.bf16.msra.mxu1 %v1629_v58 }
 0x135   : > { %1514 = vmatprep.subr.bf16.mxu1 %v1865_v0 }
 0x1df   : > { %v784_v23 = vpop.f32.mrf.mxu1 }
 0x1e0   : > { %v785_v24 = vadd.f32 %v1378_v22, %v784_v23  ;;  %v1630_v23 = vld [vmem:[#allocation7 + $0x8] sm:$0xff]  }
 0x1e1   : > { %v1480_v25 = vpop.f32.mrf.mxu1  ;;  %1515 = vmatpush3.bf16.msra.mxu1 %v1630_v23 }
 0x1e2   : > { %v1387_v26 = vmul.f32 -1.442695, %v785_v24  ;;  %1516 = vmatprep.subr.bf16.mxu1 %v1865_v0  ;;  %v1631_v24 = vld [vmem:[#allocation7] sm:$0xff]  }
 0x1e3   : > { %v787_v27 = vpop.f32.mrf.mxu1 }
 0x1e4   : > { %1632 = vpow2.f32 %v1387_v26  ;;  %v788_v28 = vadd.f32 %v1378_v22, %v787_v27  ;;  %v1391_v26 = vld [vmem:[%s2297_s9] ss:$0 sm:$0xff] }
 0x1e5   : > { %v1481_v29 = vpop.f32.mrf.mxu1  ;;  %1517 = vmatpush3.bf16.msra.mxu1 %v1631_v24 }
 0x1e6   : > { %v1388_v30 = vmul.f32 -1.442695, %v788_v28 }
 0x1e8   : > { %1634 = vpow2.f32 %v1388_v30 }
 0x1f1   : > { %v1633_v31 = vpop.eup %1632 }
 0x1f2   : > { %v797_v32 = vadd.f32 1.0, %v1633_v31 }
 0x1f4   : > { %1636 = vrcp.f32 %v797_v32 }
 0x1f5   : > { %v1635_v33 = vpop.eup %1634 }
 0x1f6   : > { %v798_v34 = vadd.f32 1.0, %v1635_v33  ;;  %v1400_v33 = vld [vmem:[%s2299_s11] ss:$0 sm:$0xff] }
 0x1f8   : > { %1638 = vrcp.f32 %v798_v34 }
 0x201   : > { %v1637_v36 = vpop.eup %1636 }
 0x202   : > { %v803_v37 = vmul.f32 %v1637_v36, %v610_v35  ;;  %1133 = vst [vmem:[%s2104_s30] sm:$0xff] %v1637_v36 }
 0x204   : > { %v2107_v39 = vadd.f32 %v803_v37, %v610_v35 }
 0x205   : > { %v1639_v40 = vpop.eup %1638 }
 0x206   : > { %807 = vadd.xlane.f32.xlu0 %v2107_v39  ;;  %v813_v41 = vmul.f32 %v2107_v39, %v2107_v39  ;;  %v804_v42 = vmul.f32 %v1639_v40, %v611_v38  ;;  %1134 = vst [vmem:[%s2104_s30 + $0x8] sm:$0xff] %v1639_v40 }
 0x208   : > { %815 = vadd.xlane.f32.xlu1 %v813_v41  ;;  %v2113_v43 = vadd.f32 %v804_v42, %v611_v38 }
 0x20a   : > { %809 = vadd.xlane.f32.xlu0 %v2113_v43  ;;  %v814_v44 = vmul.f32 %v2113_v43, %v2113_v43 }
 0x20c   : > { %817 = vadd.xlane.f32.xlu1 %v814_v44 }
 0x28f   : > { %v808_v59 = vpop.xlane.xlu0 %807 }
 0x290   : > { %v811_v60 = vmul.f32 0.03125, %v808_v59 }
 0x291   : > { %v816_v61 = vpop.xlane.xlu1 %815 }
 0x292   : > { %v821_v62 = vmul.f32 %v811_v60, %v811_v60  ;;  %v819_v63 = vmul.f32 0.03125, %v816_v61  ;;  %v825_v10 = vsub.f32 %v2107_v39, %v811_v60 }
 0x293   : > { %v810_v1 = vpop.xlane.xlu0 %809 }
 0x294   : > { %v823_v2 = vsub.f32 %v819_v63, %v821_v62  ;;  %v812_v3 = vmul.f32 0.03125, %v810_v1 }
 0x295   : > { %v818_v4 = vpop.xlane.xlu1 %817 }
 0x296   : > { %v827_v5 = vadd.f32 1e-05, %v823_v2  ;;  %v822_v6 = vmul.f32 %v812_v3, %v812_v3  ;;  %v820_v7 = vmul.f32 0.03125, %v818_v4  ;;  %v826_v14 = vsub.f32 %v2113_v43, %v812_v3 }
 0x298   : > { %1640 = vrsqrt.f32 %v827_v5  ;;  %v824_v8 = vsub.f32 %v820_v7, %v822_v6 }
 0x29a   : > { %v828_v9 = vadd.f32 1e-05, %v824_v8 }
 0x29c   : > { %1642 = vrsqrt.f32 %v828_v9 }
 0x2a5   : > { %v1641_v11 = vpop.eup %1640 }
 0x2a6   : > { %v831_v12 = vmul.f32 %v1641_v11, %v825_v10 }
 0x2a8   : > { %v839_v17 = vmul.f32 %v1389_v13, %v831_v12 }
 0x2a9   : > { %v1643_v15 = vpop.eup %1642 }
 0x2aa   : > { %v832_v16 = vmul.f32 %v1643_v15, %v826_v14  ;;  %v847_v20 = vadd.f32 %v1390_v18, %v839_v17 }
 0x2ac   : > { %v840_v19 = vmul.f32 %v1389_v13, %v832_v16 }
 0x2ae   : > { %v848_v21 = vadd.f32 %v1390_v18, %v840_v19 }
 0x2b0   : > { %v849_v22 = vpack.c.bf16 %v848_v21, %v847_v20 }
 0x2b2   : > { %1499 = vmatmul.mubr.bf16.vlgmr.msra.gmra.mxu0 %v849_v22 }
 0x372   : > { %v954_v25 = vpop.f32.mrf.mxu0 }
 0x373   : > { %v955_v29 = vadd.f32 %v1391_v26, %v954_v25 }
 0x374   : > { %v1500_v27 = vpop.f32.mrf.mxu0 }
 0x376   : > { %v957_v28 = vpop.f32.mrf.mxu0 }
 0x377   : > { %v958_v30 = vadd.f32 %v1391_v26, %v957_v28 }
 0x378   : > { %v1501_v31 = vpop.f32.mrf.mxu0 }
 0x379   : > { %v961_v32 = vpack.c.bf16 %v958_v30, %v955_v29 }
 0x37b   : > { %1519 = vmatmul.mubr.bf16.vlgmr.msra.gmra.mxu1 %v961_v32 }
 0x43b   : > { %v1066_v34 = vpop.f32.mrf.mxu1 }
 0x43c   : > { %v1067_v0 = vadd.f32 %v1400_v33, %v1066_v34 }
 0x43d   : > { %v1520_v35 = vpop.f32.mrf.mxu1 }
 0x43e   : > { %v1409_v36 = vmul.f32 -1.442695, %v1067_v0 }
 0x43f   : > { %v1069_v37 = vpop.f32.mrf.mxu1 }
 0x440   : > { %1644 = vpow2.f32 %v1409_v36  ;;  %v1070_v38 = vadd.f32 %v1400_v33, %v1069_v37 }
 0x441   : > { %v1521_v39 = vpop.f32.mrf.mxu1 }
 0x442   : > { %v1410_v40 = vmul.f32 -1.442695, %v1070_v38 }
 0x444   : > { %1646 = vpow2.f32 %v1410_v40 }
 0x44d   : > { %v1645_v41 = vpop.eup %1644 }
 0x44e   : > { %v1079_v42 = vadd.f32 1.0, %v1645_v41 }
 0x450   : > { %1648 = vrcp.f32 %v1079_v42 }
 0x451   : > { %v1647_v43 = vpop.eup %1646 }
 0x452   : > { %v1080_v44 = vadd.f32 1.0, %v1647_v43 }
 0x454   : > { %1650 = vrcp.f32 %v1080_v44 }
 0x45d   : > { %v1649_v45 = vpop.eup %1648 }
 0x45e   : > { %v1085_v46 = vmul.f32 %v1649_v45, %v847_v20  ;;  %1135 = vst [vmem:[%s2147_s19] sm:$0xff] %v1649_v45 }
 0x460   : > { %v2150_v47 = vadd.f32 %v1085_v46, %v847_v20 }
 0x461   : > { %v1651_v48 = vpop.eup %1650 }
 0x462   : > { %1089 = vadd.xlane.f32.xlu0 %v2150_v47  ;;  %v1086_v49 = vmul.f32 %v1651_v48, %v848_v21  ;;  %1136 = vst [vmem:[%s2147_s19 + $0x8] sm:$0xff] %v1651_v48  ;;  %v1095_v50 = vmul.f32 %v2150_v47, %v2150_v47 }
 0x464   : > { %v2156_v51 = vadd.f32 %v1086_v49, %v848_v21 }
 0x466   : > { %1097 = vadd.xlane.f32.xlu0 %v1095_v50  ;;  %1091 = vadd.xlane.f32.xlu1 %v2156_v51  ;;  %v1096_v52 = vmul.f32 %v2156_v51, %v2156_v51 }
 0x46a   : > { %1099 = vadd.xlane.f32.xlu1 %v1096_v52 }
 0x46b   : > { %1747 = shalt.err (!%p1744_p0)
}
 0x46c   : > { %s1748_s30 = scalar_lea.hbm %s2169_s21, 256  ;;  %s1752_s17 = scalar_lea.hbm %s2303_s15, 1024 }
 0x46d   : > { %p1749_p6 = scmp.ne.s32.totalorder %s2169_s21, %s1748_s30  ;;  %p1753_p1 = scmp.lt.s32.totalorder %s2169_s21, %s2303_s15 }
 0x46e   : > { %p1754_p5 = scmp.lt.s32.totalorder %s1752_s17, %s1748_s30 }
 0x46f   : > { %p1750_p9 = pnand %p1749_p6, %p2338_p3 }
 0x470   : > { %p1755_p10 = por %p1754_p5, %p1753_p1 }
 0x471   : > { %p1751_p13 = pneg %p1750_p9 }
 0x473   : > { %p1756_p12 = pnand %p1755_p10, %p1751_p13 }
 0x475   : > { %1759 = shalt.err (!%p1756_p12)
}
 0x476   : > { %s1868_s1 = smov 128   ;;  %s1869_s20 = smov 8  }
 0x477   : > { %1535 = dma.vmem_to_hbm [thread:$0]  (%p2338_p3), %s2172_s26, 256, %s2169_s21, %s2174_s18, %s1868_s1, %s1868_s1, %s1869_s20  }
 0x478   : > { %s2204_s30 = scalar_lea.hbm %s2304_s16, %s2163_s23  ;;  %s1193_s24 = sshll.u32 %s2147_s19, 4  ;;  %s1194_s24 = int_to_ptr.vmem [resolvable:$true] %s1193_s24 }
 0x479   : > { %s1760_s27 = scalar_lea.vmem %s1194_s24, 256  ;;  %s1870_s17 = smov [#allocation11]  }
 0x47a   : > { %p1761_p2 = scmp.ne.s32.totalorder %s1194_s24, %s1760_s27  ;;  %s1764_s25 = sshll.u32 %s1870_s17, 4  ;;  %s1765_s25 = int_to_ptr.vmem [resolvable:$false] %s1764_s25 }
 0x47b   : > { %s1766_s3 = scalar_lea.vmem %s1765_s25, 512  ;;  %p1767_p8 = scmp.lt.s32.totalorder %s1194_s24, %s1765_s25 }
 0x47c   : > { %p1762_p4 = pnand %p1761_p2, %p2338_p3  ;;  %p1768_p11 = scmp.lt.s32.totalorder %s1766_s3, %s1760_s27 }
 0x47e   : > { %p1763_p7 = pneg %p1762_p4  ;;  %p1769_p0 = por %p1768_p11, %p1767_p8 }
 0x480   : > { %p1770_p6 = pnand %p1769_p0, %p1763_p7 }
 0x482   : > { %1773 = shalt.err (!%p1770_p6)
}
 0x483   : > { %s1774_s19 = scalar_lea.hbm %s2204_s30, 256  ;;  %s1778_s2 = scalar_lea.hbm %s2304_s16, 1024 }
 0x484   : > { %p1775_p9 = scmp.ne.s32.totalorder %s2204_s30, %s1774_s19  ;;  %p1779_p5 = scmp.lt.s32.totalorder %s2204_s30, %s2304_s16 }
 0x485   : > { %p1780_p10 = scmp.lt.s32.totalorder %s1778_s2, %s1774_s19 }
 0x486   : > { %p1776_p13 = pnand %p1775_p9, %p2338_p3 }
 0x487   : > { %p1781_p12 = por %p1780_p10, %p1779_p5 }
 0x488   : > { %p1777_p1 = pneg %p1776_p13 }
 0x48a   : > { %p1782_p2 = pnand %p1781_p12, %p1777_p1 }
 0x48c   : > { %1785 = shalt.err (!%p1782_p2)
}
 0x48d   : > { %1536 = dma.vmem_to_hbm [thread:$0]  (%p2338_p3), %s1194_s24, 256, %s2204_s30, %s2174_s18, %s1868_s1, %s1868_s1, %s1869_s20  }
 0x48e   : > { %v1411_v6 = vld [vmem:[%s2300_s12] ss:$0 sm:$0xff]  ;;  %s579_s27 = scalar_lea.vmem [#allocation8], %s2101_s29  ;;  %s2240_s26 = scalar_lea.hbm %s2302_s14, %s2163_s23 }
 0x48f   : > { %v1412_v8 = vld [vmem:[%s2301_s13] ss:$0 sm:$0xff]  ;;  %s1161_s25 = sshll.u32 %s579_s27, 4  ;;  %s2339_s2 = sand.u32 1, %s1850_s22   ;;  %s2242_s25 = int_to_ptr.vmem [resolvable:$true] %s1161_s25 }
 0x490   : > { %s1138_s28 = scalar_lea.sflag [#allocation4], %s2339_s2  ;;  %s1786_s17 = scalar_lea.vmem %s2242_s25, 256 }
 0x491   : > { %p1787_p4 = scmp.ne.s32.totalorder %s2242_s25, %s1786_s17  ;;  %s1871_s29 = smov [#allocation8]  }
 0x492   : > { %s1790_s3 = sshll.u32 %s1871_s29, 4  ;;  %s1791_s3 = int_to_ptr.vmem [resolvable:$false] %s1790_s3 }
 0x493   : > { %p1788_p7 = pnand %p1787_p4, %p2338_p3  ;;  %s1792_s18 = scalar_lea.vmem %s1791_s3, 512 }
 0x494   : > { %p1793_p11 = scmp.lt.s32.totalorder %s2242_s25, %s1791_s3  ;;  %p1794_p0 = scmp.lt.s32.totalorder %s1792_s18, %s1786_s17 }
 0x495   : > { %p1789_p8 = pneg %p1788_p7 }
 0x496   : > { %p1795_p6 = por %p1794_p0, %p1793_p11 }
 0x498   : > { %p1796_p9 = pnand %p1795_p6, %p1789_p8 }
 0x4eb   : > { %v1090_v53 = vpop.xlane.xlu0 %1089 }
 0x4ec   : > { %v1093_v54 = vmul.f32 0.03125, %v1090_v53 }
 0x4ee   : > { %v1103_v57 = vmul.f32 %v1093_v54, %v1093_v54  ;;  %v1107_v4 = vsub.f32 %v2150_v47, %v1093_v54 }
 0x4ef   : > { %v1098_v55 = vpop.xlane.xlu0 %1097  ;;  %v1092_v56 = vpop.xlane.xlu1 %1091 }
 0x4f0   : > { %v1101_v58 = vmul.f32 0.03125, %v1098_v55  ;;  %v1094_v59 = vmul.f32 0.03125, %v1092_v56 }
 0x4f2   : > { %v1105_v60 = vsub.f32 %v1101_v58, %v1103_v57  ;;  %v1104_v63 = vmul.f32 %v1094_v59, %v1094_v59  ;;  %v1108_v10 = vsub.f32 %v2156_v51, %v1094_v59 }
 0x4f3   : > { %v1100_v61 = vpop.xlane.xlu1 %1099 }
 0x4f4   : > { %v1109_v62 = vadd.f32 1e-05, %v1105_v60  ;;  %v1102_v1 = vmul.f32 0.03125, %v1100_v61 }
 0x4f6   : > { %1652 = vrsqrt.f32 %v1109_v62  ;;  %v1106_v2 = vsub.f32 %v1102_v1, %v1104_v63 }
 0x4f8   : > { %v1110_v3 = vadd.f32 1e-05, %v1106_v2 }
 0x4fa   : > { %1654 = vrsqrt.f32 %v1110_v3 }
 0x503   : > { %v1653_v5 = vpop.eup %1652 }
 0x504   : > { %v1113_v7 = vmul.f32 %v1653_v5, %v1107_v4 }
 0x506   : > { %v1121_v9 = vmul.f32 %v1411_v6, %v1113_v7 }
 0x507   : > { %v1655_v11 = vpop.eup %1654 }
 0x508   : > { %v1114_v12 = vmul.f32 %v1655_v11, %v1108_v10  ;;  %v1129_v13 = vadd.f32 %v1412_v8, %v1121_v9 }
 0x50a   : > { %v1122_v14 = vmul.f32 %v1411_v6, %v1114_v12  ;;  %1131 = vst [vmem:[%s579_s27] sm:$0xff] %v1129_v13 }
 0x50c   : > { %v1130_v15 = vadd.f32 %v1412_v8, %v1122_v14 }
 0x50e   : > { %1132 = vst [vmem:[%s579_s27 + $0x8] sm:$0xff] %v1130_v15 }
 0x50f   : > { %1799 = shalt.err (!%p1796_p9)
}
 0x510   : > { %s1800_s23 = scalar_lea.hbm %s2240_s26, 256  ;;  %s1804_s27 = scalar_lea.hbm %s2302_s14, 1024 }
 0x511   : > { %p1801_p13 = scmp.ne.s32.totalorder %s2240_s26, %s1800_s23  ;;  %p1805_p10 = scmp.lt.s32.totalorder %s2240_s26, %s2302_s14 }
 0x512   : > { %p1806_p12 = scmp.lt.s32.totalorder %s1804_s27, %s1800_s23 }
 0x513   : > { %p1802_p1 = pnand %p1801_p13, %p2338_p3 }
 0x514   : > { %p1807_p2 = por %p1806_p12, %p1805_p10 }
 0x515   : > { %p1803_p5 = pneg %p1802_p1 }
 0x517   : > { %p1808_p4 = pnand %p1807_p2, %p1803_p5 }
 0x519   : > { %1811 = shalt.err (!%p1808_p4)
}
 0x51a   : > { %1534 = dma.vmem_to_hbm [thread:$0]  (%p2338_p3), %s2242_s25, 256, %s2240_s26, %s1138_s28, %s1868_s1, %s1868_s1, %s1869_s20  }
 0x51b PF: > { %s2340_s2 = sld [smem:[#allocation18_spill]] }
 0x51c   : > { %s2341_s17 = sld [smem:[#allocation16_spill]] }
 0x51d   : > { %s2342_s29 = sld [smem:[#allocation21_spill]] }
 0x521   : > { %p1566_p7 = scmp.ge.s32.totalorder %s2340_s2, 2 }
 0x522   : > { %s1208_s3 = sand.u32 1, %s2341_s17  }
 0x523   : > { %p2343_p8 = scmp.ne.s32.totalorder %s2342_s29, 0  ;;  %s1209_s18 = scalar_lea.sflag [#allocation4], %s1208_s3 }
 0x525   : > { %p1551_p11 = pnand %p1566_p7, %p2343_p8 }
 0x527   : > { %p1552_p0 = pneg %p1551_p11 }
 0x529   : > { %1837 = dma.done.wait (%p1552_p0), %s1209_s18, 256  }
 0x52a   : > { %1839 = vsyncadd (%p1552_p0), %s1209_s18, 4294967040  ;;  %s2344_s0 = sadd.s32 4294967294, %s2340_s2  }
 0x52b   : > { %s1217_s23 = sand.u32 1, %s2344_s0  }
 0x52c   : > { %s1218_s30 = scalar_lea.sflag [#allocation10], %s1217_s23 }
 0x52d   : > { %1841 = dma.done.wait (%p1552_p0), %s1218_s30, 512  }
 0x52e   : > { %1843 = vsyncadd (%p1552_p0), %s1218_s30, 4294966784  ;;  %s2345_s24 = sld [smem:[#allocation19_spill]]  ;;  %s2348_s21 = smov %s1850_s22 }
 0x52f   : > { %s2346_s1 = sld [smem:[#allocation17_spill]] }
 0x530   : > { %s2347_s23 = sld [smem:[#allocation20_spill]] }
 0x534   : > { %p32_p3 = scmp.ge.s32.totalorder %s2345_s24, 6  }
 0x535   : > { %s2349_s22 = smov %s2346_s1 }
 0x536   :  { %34 = sbr.rel (!%p32_p3) target bundleno = 12 (0xc), region = 159 }
 0x53b   :  { %1232 = vsyncpa [#allocation3], 1 }
 0x53c   :  { %1234 = vsyncpa [#allocation3 + $0x1], 1 }
 0x53d   :  { %1235 = vsyncpa [#allocation6], 1 }
 0x53e   :  { %1236 = vsyncpa [#allocation4], 1 }
 0x53f   :  { %1238 = vsyncpa [#allocation4 + $0x1], 1 }
 0x540   :  { %1239 = vsyncpa [#allocation10], 1 }
 0x541   :  { %1241 = vsyncpa [#allocation10 + $0x1], 1 }

</bundles_post_ra>
